<compile_context>
chip_gen: v5e
topology: v5e:2x2
jax: 0.10.0
libtpu: 0.0.40
codegen_flags: <defaults>
</compile_context>

<pallas_src>
import functools

import jax
import jax.numpy as jnp
from jax.experimental import pallas as pl
from jax.experimental.pallas import tpu as pltpu

EPS = 1e-5


# ----------------------------------------------------------------------------
# Pure-VPU lane folding helpers (static 128-lane-aligned slices, no XLU).
# ----------------------------------------------------------------------------
def _lane_fold(a, lane_w):
    """Sum lane_w-wide groups along the last axis with elementwise vreg adds."""
    total = a.shape[-1]
    acc = a[..., 0:lane_w]
    for k in range(1, total // lane_w):
        acc = acc + a[..., k * lane_w:(k + 1) * lane_w]
    return acc


def _lane_fold_sum_sq(a, lane_w):
    """Lane-folded (sum, sum-of-squares) in one sweep over the last axis."""
    total = a.shape[-1]
    blk = a[..., 0:lane_w]
    s = blk
    q = blk * blk
    for k in range(1, total // lane_w):
        blk = a[..., k * lane_w:(k + 1) * lane_w]
        s = s + blk
        q = q + blk * blk
    return s, q


# ----------------------------------------------------------------------------
# Resident single-pass kernel: whole (folded) x lives in VMEM, one HBM read.
# ----------------------------------------------------------------------------
def _resident_kernel(x_ref, gamma_ref, beta_ref, fold_ref, wf_ref, bf_ref,
                     o_ref, *, inv_count, inv_hw, eps, lane_w):
    xb = x_ref[...].astype(jnp.float32)                       # (NG, GC, HW)
    s3, q3 = _lane_fold_sum_sq(xb, lane_w)                    # (NG, GC, lane_w)
    sw = jnp.sum(s3, axis=0)                                  # (GC, lane_w)
    qw = jnp.sum(q3, axis=0)
    # Fold the G batch groups sharing a channel (tiny constant matmul), then
    # one lane reduce -> per-channel totals replicated on every folded row.
    s = jnp.sum(jnp.dot(fold_ref[...], sw, preferred_element_type=jnp.float32),
                axis=1, keepdims=True)                        # (GC, 1)
    q = jnp.sum(jnp.dot(fold_ref[...], qw, preferred_element_type=jnp.float32),
                axis=1, keepdims=True)
    mean = s * inv_count
    var = jnp.maximum(q * inv_count - mean * mean, 0.0)       # clamp cancellation
    inv_std = jax.lax.rsqrt(var + eps)
    scale = gamma_ref[...] * inv_std                          # (GC, 1)
    shift = beta_ref[...] - mean * scale
    y = jnp.maximum(xb * scale + shift, 0.0)                  # BN + ReLU
    pooled = jnp.sum(_lane_fold(y, lane_w), axis=2) * inv_hw  # (NG, GC)
    out = jnp.dot(pooled, wf_ref[...], preferred_element_type=jnp.float32)
    o_ref[...] = (out + bf_ref[...]).astype(o_ref.dtype)


# ----------------------------------------------------------------------------
# Streaming two-phase kernel (x read from HBM twice) for large inputs.
#   grid = (phase, N-tiles, HW-tiles); phase 0 = stats, phase 1 = apply+pool+FC.
# ----------------------------------------------------------------------------
def _streaming_kernel(x_ref, gamma_ref, beta_ref, fold_ref, wf_ref, bf_ref,
                      o_ref, ch_sum, ch_sumsq, pooled, scale_sc, shift_sc,
                      *, inv_count, inv_hw, eps, lane_w):
    p = pl.program_id(0)
    n = pl.program_id(1)
    h = pl.program_id(2)
    last_h = pl.num_programs(2) - 1

    @pl.when(jnp.logical_and(p == 0, jnp.logical_and(n == 0, h == 0)))
    def _init_stats():
        ch_sum[...] = jnp.zeros_like(ch_sum)
        ch_sumsq[...] = jnp.zeros_like(ch_sumsq)

    @pl.when(p == 0)
    def _accum_stats():
        xb = x_ref[...].astype(jnp.float32)                   # (TN, GC, THW)
        s, q = _lane_fold_sum_sq(xb, lane_w)                  # (TN, GC, lane_w)
        ch_sum[...] += jnp.sum(s, axis=0)
        ch_sumsq[...] += jnp.sum(q, axis=0)

    @pl.when(jnp.logical_and(p == 1, jnp.logical_and(n == 0, h == 0)))
    def _fold_affine():
        # Hoisted: computed once per kernel, reused by every phase-1 step.
        s = jnp.sum(jnp.dot(fold_ref[...], ch_sum[...],
                            preferred_element_type=jnp.float32),
                    axis=1, keepdims=True)                    # (GC, 1)
        q = jnp.sum(jnp.dot(fold_ref[...], ch_sumsq[...],
                            preferred_element_type=jnp.float32),
                    axis=1, keepdims=True)
        mean = s * inv_count
        var = jnp.maximum(q * inv_count - mean * mean, 0.0)
        inv_std = jax.lax.rsqrt(var + eps)
        scale = gamma_ref[...] * inv_std
        scale_sc[...] = scale
        shift_sc[...] = beta_ref[...] - mean * scale

    @pl.when(jnp.logical_and(p == 1, h == 0))
    def _init_tile():
        pooled[...] = jnp.zeros_like(pooled)
        o_ref[...] = jnp.zeros_like(o_ref)    # defensive: block always defined

    @pl.when(p == 1)
    def _normalize_pool():
        xb = x_ref[...].astype(jnp.float32)                   # (TN, GC, THW)
        y = jnp.maximum(xb * scale_sc[...] + shift_sc[...], 0.0)
        pooled[...] += _lane_fold(y, lane_w)                  # (TN, GC, lane_w)

    @pl.when(jnp.logical_and(p == 1, h == last_h))
    def _finalize():
        pm = jnp.sum(pooled[...], axis=2) * inv_hw            # (TN, GC)
        out = jnp.dot(pm, wf_ref[...], preferred_element_type=jnp.float32)
        o_ref[...] = (out + bf_ref[...]).astype(o_ref.dtype)


# ----------------------------------------------------------------------------
# Wrapper: layout folding, generation-aware tiling, path selection.
# ----------------------------------------------------------------------------
def _vmem_capacity_bytes():
    try:
        info = pltpu.get_tpu_info()
        cap = getattr(info, "vmem_capacity_bytes", None)
        if cap:
            return int(cap)
    except Exception:
        pass
    return 64 << 20          # conservative (v7x-sized) fallback


def _tn_candidates(ng):
    cands = {ng}             # full extent is always a legal second-minor block
    t = 8
    while t < ng:
        if ng % t == 0:
            cands.add(t)     # multiples of 8 keep the output block tile-aligned
        t += 8
    return sorted(cands)


def _select_tiles(ng, gc, hw, itemsize, block_budget):
    if hw % 128 == 0:
        thw_opts = sorted(t for t in range(128, hw + 1, 128) if hw % t == 0)
    else:
        thw_opts = [hw]      # non-128 HW: full-extent lane block (small in practice)
    tn_opts = _tn_candidates(ng)
    tn_min = tn_opts[0]
    # Lane width is the DMA-efficiency knob: maximize thw first, shrink tn first.
    thw = thw_opts[0]
    for t in thw_opts:
        if tn_min * gc * t * itemsize <= block_budget:
            thw = t
    tn = tn_min
    for t in tn_opts:
        if t * gc * thw * itemsize <= block_budget:
            tn = t
    return tn, thw


def output_layer_forward(x_nchw, gamma, beta, w, b, *,
                         force_streaming=False, n_tile=None, hw_tile=None):
    """Forward of `output_layer`: BN2d (batch stats) + ReLU + GAP + Linear.

    x_nchw: (N, C, H, W); gamma/beta: (C,); w: (num_classes, C); b: (num_classes,).
    """
    N, C, H, W = x_nchw.shape
    HW = H * W
    num_classes = w.shape[0]
    ncpad = ((num_classes + 127) // 128) * 128
    itemsize = jnp.dtype(x_nchw.dtype).itemsize

    # --- sublane fold: (N, C, HW) -> (N//G, G*C, HW); free reshape of NCHW.
    sub_target = 8 * max(1, 4 // itemsize)          # 8 for f32, 16 for bf16
    G = 1
    if C < sub_target and sub_target % C == 0:
        g = sub_target // C
        while g > 1 and N % g != 0:
            g //= 2
        G = g
    NG, GC, GNC = N // G, G * C, G * ncpad

    x = x_nchw.reshape(NG, GC, HW)
    gamma_f = jnp.tile(gamma.astype(jnp.float32).reshape(C, 1), (G, 1))   # (GC,1)
    beta_f = jnp.tile(beta.astype(jnp.float32).reshape(C, 1), (G, 1))
    # Fold matrix: 1 where two folded rows carry the same channel.
    ch_id = jnp.arange(GC, dtype=jnp.int32) % C
    fold_mat = (ch_id[:, None] == ch_id[None, :]).astype(jnp.float32)     # (GC,GC)
    # Block-diagonal Linear weights so the matmul stays in folded layout:
    #   wfold[g*C + c, g*ncpad + k] = W[k, c]
    wpad = jnp.zeros((C, ncpad), jnp.float32).at[:, :num_classes].set(
        jnp.transpose(w).astype(jnp.float32))
    if G == 1:
        wfold = wpad
    else:
        eye = jnp.eye(G, dtype=jnp.float32)
        wfold = (eye[:, None, :, None] * wpad[None, :, None, :]).reshape(GC, GNC)
    bpad = jnp.zeros((ncpad,), jnp.float32).at[:num_classes].set(
        b.astype(jnp.float32))
    bfold = jnp.tile(bpad, G).reshape(1, GNC)

    lane_w_full = 128 if HW % 128 == 0 else HW
    inv_count = 1.0 / float(N * HW)
    inv_hw = 1.0 / float(HW)

    # --- generation-aware budgets (128 MiB VMEM on v5e/v6e, 64 MiB on v7x).
    vmem_cap = _vmem_capacity_bytes()
    if vmem_cap >= (96 << 20):
        resident_budget, block_budget, vmem_ceiling = 56 << 20, 12 << 20, 80 << 20
    else:
        resident_budget, block_budget, vmem_ceiling = 22 << 20, 5 << 20, 44 << 20

    param_bytes = 4 * (2 * GC + GC * GC + GC * GNC + GNC + NG * GNC)
    x_bytes = NG * GC * HW * itemsize
    resident_est = x_bytes + 2 * NG * GC * HW * 4 + param_bytes + (2 << 20)

    if not force_streaming and resident_est <= resident_budget:
        # ----- resident single-pass path: x crosses HBM exactly once ---------
        kernel = functools.partial(_resident_kernel, inv_count=inv_count,
                                   inv_hw=inv_hw, eps=EPS, lane_w=lane_w_full)
        out_fold = pl.pallas_call(
            kernel,
            out_shape=jax.ShapeDtypeStruct((NG, GNC), jnp.float32),
            compiler_params=pltpu.CompilerParams(
                vmem_limit_bytes=int(min(max(resident_est + (4 << 20), 16 << 20),
                                         vmem_ceiling))),
        )(x, gamma_f, beta_f, fold_mat, wfold, bfold)
    else:
        # ----- streaming two-phase path ---------------------------------------
        tn, thw = _select_tiles(NG, GC, HW, itemsize, block_budget)
        if n_tile is not None:
            tn = n_tile
        if hw_tile is not None:
            thw = hw_tile
        assert NG % tn == 0 and (tn % 8 == 0 or tn == NG), (NG, tn)
        assert HW % thw == 0 and (thw % 128 == 0 or thw == HW), (HW, thw)
        lane_w = 128 if thw % 128 == 0 else thw

        kernel = functools.partial(_streaming_kernel, inv_count=inv_count,
                                   inv_hw=inv_hw, eps=EPS, lane_w=lane_w)
        x_block = tn * GC * thw * itemsize
        scratch_bytes = 4 * (2 * GC * lane_w + tn * GC * lane_w + 2 * GC)
        est = (2 * x_block + 2 * param_bytes + 2 * tn * GNC * 4
               + scratch_bytes + (2 << 20))
        vmem_limit = int(min(max(est, 16 << 20), max(vmem_ceiling, est)))

        grid = (2, NG // tn, HW // thw)
        out_fold = pl.pallas_call(
            kernel,
            out_shape=jax.ShapeDtypeStruct((NG, GNC), jnp.float32),
            grid_spec=pltpu.PrefetchScalarGridSpec(
                num_scalar_prefetch=0,
                grid=grid,
                in_specs=[
                    pl.BlockSpec((tn, GC, thw), lambda p, n, h: (n, 0, h)),
                    pl.BlockSpec((GC, 1), lambda p, n, h: (0, 0)),
                    pl.BlockSpec((GC, 1), lambda p, n, h: (0, 0)),
                    pl.BlockSpec((GC, GC), lambda p, n, h: (0, 0)),
                    pl.BlockSpec((GC, GNC), lambda p, n, h: (0, 0)),
                    pl.BlockSpec((1, GNC), lambda p, n, h: (0, 0)),
                ],
                # Phase 0 pins output block 0 (untouched); each phase-1 N tile
                # is zero-inited, written once at its last HW tile, flushed once.
                out_specs=pl.BlockSpec((tn, GNC), lambda p, n, h: (p * n, 0)),
                scratch_shapes=[
                    pltpu.VMEM((GC, lane_w), jnp.float32),      # channel sums
                    pltpu.VMEM((GC, lane_w), jnp.float32),      # channel sumsq
                    pltpu.VMEM((tn, GC, lane_w), jnp.float32),  # pooled partials
                    pltpu.VMEM((GC, 1), jnp.float32),           # folded BN scale
                    pltpu.VMEM((GC, 1), jnp.float32),           # folded BN shift
                ],
            ),
            compiler_params=pltpu.CompilerParams(
                # Cross-phase stats scratch keeps every axis sequential.
                dimension_semantics=("arbitrary", "arbitrary", "arbitrary"),
                vmem_limit_bytes=vmem_limit),
        )(x, gamma_f, beta_f, fold_mat, wfold, bfold)

    # (NG, G*ncpad) -> (N, ncpad) is the inverse of the batch fold (free).
    return out_fold.reshape(N, ncpad)[:, :num_classes]


def reference_forward(x_nchw, gamma, beta, w, b):
    x = x_nchw.astype(jnp.float32)
    mean = jnp.mean(x, axis=(0, 2, 3), keepdims=True)
    var = jnp.mean((x - mean) ** 2, axis=(0, 2, 3), keepdims=True)
    y = (x - mean) / jnp.sqrt(var + EPS)
    y = y * gamma.reshape(1, -1, 1, 1) + beta.reshape(1, -1, 1, 1)
    y = jnp.maximum(y, 0.0)
    pooled = jnp.mean(y, axis=(2, 3))                  # (N, C)
    return pooled @ w.T + b


if __name__ == "__main__":
    key = jax.random.PRNGKey(0)
    kx, kg, kb, kw, kbias, kx2, k3 = jax.random.split(key, 7)

    # Shapes implied by the module: batch=2, filters(C)=4, spatial=16x16, classes=8.
    N, C, H, W, num_classes = 2, 4, 16, 16, 8
    x = jax.random.normal(kx, (N, C, H, W), dtype=jnp.float32)
    gamma = jax.random.uniform(kg, (C,), dtype=jnp.float32, minval=0.5, maxval=1.5)
    beta = jax.random.normal(kb, (C,), dtype=jnp.float32) * 0.1
    w = jax.random.normal(kw, (num_classes, C), dtype=jnp.float32) * (1.0 / C ** 0.5)
    bias = jax.random.normal(kbias, (num_classes,), dtype=jnp.float32) * 0.05

    # 1) resident single-pass path (x fits in VMEM).
    out = jax.block_until_ready(output_layer_forward(x, gamma, beta, w, bias))
    ref = reference_forward(x, gamma, beta, w, bias)
    assert out.shape == (N, num_classes)
    assert jnp.allclose(out, ref, atol=2e-4, rtol=2e-4), (out, ref)

    # 2) forced streaming path with multiple N tiles and HW tiles
    #    (exercises accumulators, hoisted affine and per-tile finalize).
    N2 = 32
    x2 = jax.random.normal(kx2, (N2, C, H, W), dtype=jnp.float32)
    out2 = jax.block_until_ready(
        output_layer_forward(x2, gamma, beta, w, bias,
                             force_streaming=True, n_tile=8, hw_tile=128))
    ref2 = reference_forward(x2, gamma, beta, w, bias)
    assert out2.shape == (N2, num_classes)
    assert jnp.allclose(out2, ref2, atol=2e-4, rtol=2e-4), (out2, ref2)

    # 3) no-fold config (C=8) with a non-128-divisible spatial size, streaming.
    k3x, k3g, k3b, k3w, k3bias = jax.random.split(k3, 5)
    N3, C3, H3, W3, nc3 = 4, 8, 7, 7, 10
    x3 = jax.random.normal(k3x, (N3, C3, H3, W3), dtype=jnp.float32)
    gamma3 = jax.random.uniform(k3g, (C3,), dtype=jnp.float32, minval=0.5, maxval=1.5)
    beta3 = jax.random.normal(k3b, (C3,), dtype=jnp.float32) * 0.1
    w3 = jax.random.normal(k3w, (nc3, C3), dtype=jnp.float32) * (1.0 / C3 ** 0.5)
    bias3 = jax.random.normal(k3bias, (nc3,), dtype=jnp.float32) * 0.05
    out3 = jax.block_until_ready(
        output_layer_forward(x3, gamma3, beta3, w3, bias3, force_streaming=True))
    ref3 = reference_forward(x3, gamma3, beta3, w3, bias3)
    assert out3.shape == (N3, nc3)
    assert jnp.allclose(out3, ref3, atol=2e-4, rtol=2e-4), (out3, ref3)

    print("KERNEL_OK")
</pallas_src>

<mosaic_0001>
module attributes {stable_mosaic.version = 11 : i64} {
  func.func @_resident_kernel(%arg0: memref<1x8x256xf32, #tpu.memory_space<vmem>>, %arg1: memref<8x1xf32, #tpu.memory_space<vmem>>, %arg2: memref<8x1xf32, #tpu.memory_space<vmem>>, %arg3: memref<8x8xf32, #tpu.memory_space<vmem>>, %arg4: memref<8x256xf32, #tpu.memory_space<vmem>>, %arg5: memref<1x256xf32, #tpu.memory_space<vmem>>, %arg6: memref<1x256xf32, #tpu.memory_space<vmem>>) attributes {dimension_semantics = [], scalar_prefetch = 0 : i64, scratch_operands = 0 : i64, tpu.core_type = #tpu.core_type<tc>} {
    %c0 = arith.constant 0 : index
    %c0_0 = arith.constant 0 : index
    %c0_1 = arith.constant 0 : index
    %0 = vector.load %arg0[%c0, %c0_0, %c0_1] : memref<1x8x256xf32, #tpu.memory_space<vmem>>, vector<1x8x256xf32>
    %1 = vector.extract_strided_slice %0 {offsets = [0, 0, 0], sizes = [1, 8, 128], strides = [1, 1, 1]} : vector<1x8x256xf32> to vector<1x8x128xf32>
    %2 = arith.mulf %1, %1 : vector<1x8x128xf32>
    %3 = vector.extract_strided_slice %0 {offsets = [0, 0, 128], sizes = [1, 8, 128], strides = [1, 1, 1]} : vector<1x8x256xf32> to vector<1x8x128xf32>
    %4 = arith.addf %1, %3 : vector<1x8x128xf32>
    %5 = arith.mulf %3, %3 : vector<1x8x128xf32>
    %6 = arith.addf %2, %5 : vector<1x8x128xf32>
    %cst = arith.constant dense<0.000000e+00> : vector<8x128xf32>
    %7 = vector.multi_reduction <add>, %4, %cst [0] : vector<1x8x128xf32> to vector<8x128xf32>
    %cst_2 = arith.constant dense<0.000000e+00> : vector<8x128xf32>
    %8 = vector.multi_reduction <add>, %6, %cst_2 [0] : vector<1x8x128xf32> to vector<8x128xf32>
    %c0_3 = arith.constant 0 : index
    %c0_4 = arith.constant 0 : index
    %9 = vector.load %arg3[%c0_3, %c0_4] : memref<8x8xf32, #tpu.memory_space<vmem>>, vector<8x8xf32>
    %cst_5 = arith.constant dense<0.000000e+00> : vector<8x128xf32>
    %10 = tpu.matmul %9, %7, %cst_5 {dimension_numbers = #tpu.dot_dimension_numbers<[1], [0], [0], [1], [0, 0, 1, 1], [], []>} : vector<8x8xf32>, vector<8x128xf32>, vector<8x128xf32> -> vector<8x128xf32>
    %cst_6 = arith.constant dense<0.000000e+00> : vector<8xf32>
    %11 = vector.multi_reduction <add>, %10, %cst_6 [1] : vector<8x128xf32> to vector<8xf32>
    %12 = vector.shape_cast %11 : vector<8xf32> to vector<8x1xf32>
    %c0_7 = arith.constant 0 : index
    %c0_8 = arith.constant 0 : index
    %13 = vector.load %arg3[%c0_7, %c0_8] : memref<8x8xf32, #tpu.memory_space<vmem>>, vector<8x8xf32>
    %cst_9 = arith.constant dense<0.000000e+00> : vector<8x128xf32>
    %14 = tpu.matmul %13, %8, %cst_9 {dimension_numbers = #tpu.dot_dimension_numbers<[1], [0], [0], [1], [0, 0, 1, 1], [], []>} : vector<8x8xf32>, vector<8x128xf32>, vector<8x128xf32> -> vector<8x128xf32>
    %cst_10 = arith.constant dense<0.000000e+00> : vector<8xf32>
    %15 = vector.multi_reduction <add>, %14, %cst_10 [1] : vector<8x128xf32> to vector<8xf32>
    %16 = vector.shape_cast %15 : vector<8xf32> to vector<8x1xf32>
    %cst_11 = arith.constant 0.001953125 : f32
    %17 = vector.broadcast %cst_11 : f32 to vector<8x1xf32>
    %18 = arith.mulf %12, %17 : vector<8x1xf32>
    %cst_12 = arith.constant 0.001953125 : f32
    %19 = vector.broadcast %cst_12 : f32 to vector<8x1xf32>
    %20 = arith.mulf %16, %19 : vector<8x1xf32>
    %21 = arith.mulf %18, %18 : vector<8x1xf32>
    %22 = arith.subf %20, %21 : vector<8x1xf32>
    %cst_13 = arith.constant 0.000000e+00 : f32
    %23 = vector.broadcast %cst_13 : f32 to vector<8x1xf32>
    %24 = arith.maximumf %22, %23 : vector<8x1xf32>
    %cst_14 = arith.constant 9.99999974E-6 : f32
    %25 = vector.broadcast %cst_14 : f32 to vector<8x1xf32>
    %26 = arith.addf %24, %25 : vector<8x1xf32>
    %27 = math.rsqrt %26 : vector<8x1xf32>
    %c0_15 = arith.constant 0 : index
    %c0_16 = arith.constant 0 : index
    %28 = vector.load %arg1[%c0_15, %c0_16] : memref<8x1xf32, #tpu.memory_space<vmem>>, vector<8x1xf32>
    %29 = arith.mulf %28, %27 : vector<8x1xf32>
    %c0_17 = arith.constant 0 : index
    %c0_18 = arith.constant 0 : index
    %30 = vector.load %arg2[%c0_17, %c0_18] : memref<8x1xf32, #tpu.memory_space<vmem>>, vector<8x1xf32>
    %31 = arith.mulf %18, %29 : vector<8x1xf32>
    %32 = arith.subf %30, %31 : vector<8x1xf32>
    %33 = vector.shape_cast %29 : vector<8x1xf32> to vector<1x8x1xf32>
    %34 = vector.broadcast %33 : vector<1x8x1xf32> to vector<1x8x256xf32>
    %35 = arith.mulf %0, %34 : vector<1x8x256xf32>
    %36 = vector.shape_cast %32 : vector<8x1xf32> to vector<1x8x1xf32>
    %37 = vector.broadcast %36 : vector<1x8x1xf32> to vector<1x8x256xf32>
    %38 = arith.addf %35, %37 : vector<1x8x256xf32>
    %cst_19 = arith.constant 0.000000e+00 : f32
    %39 = vector.broadcast %cst_19 : f32 to vector<1x8x256xf32>
    %40 = arith.maximumf %38, %39 : vector<1x8x256xf32>
    %41 = vector.extract_strided_slice %40 {offsets = [0, 0, 0], sizes = [1, 8, 128], strides = [1, 1, 1]} : vector<1x8x256xf32> to vector<1x8x128xf32>
    %42 = vector.extract_strided_slice %40 {offsets = [0, 0, 128], sizes = [1, 8, 128], strides = [1, 1, 1]} : vector<1x8x256xf32> to vector<1x8x128xf32>
    %43 = arith.addf %41, %42 : vector<1x8x128xf32>
    %cst_20 = arith.constant dense<0.000000e+00> : vector<1x8xf32>
    %44 = vector.multi_reduction <add>, %43, %cst_20 [2] : vector<1x8x128xf32> to vector<1x8xf32>
    %cst_21 = arith.constant 3.906250e-03 : f32
    %45 = vector.broadcast %cst_21 : f32 to vector<1x8xf32>
    %46 = arith.mulf %44, %45 : vector<1x8xf32>
    %c0_22 = arith.constant 0 : index
    %c0_23 = arith.constant 0 : index
    %47 = vector.load %arg4[%c0_22, %c0_23] : memref<8x256xf32, #tpu.memory_space<vmem>>, vector<8x256xf32>
    %cst_24 = arith.constant dense<0.000000e+00> : vector<1x256xf32>
    %48 = tpu.matmul %46, %47, %cst_24 {dimension_numbers = #tpu.dot_dimension_numbers<[1], [0], [0], [1], [0, 0, 1, 1], [], []>} : vector<1x8xf32>, vector<8x256xf32>, vector<1x256xf32> -> vector<1x256xf32>
    %c0_25 = arith.constant 0 : index
    %c0_26 = arith.constant 0 : index
    %49 = vector.load %arg5[%c0_25, %c0_26] : memref<1x256xf32, #tpu.memory_space<vmem>>, vector<1x256xf32>
    %50 = arith.addf %48, %49 : vector<1x256xf32>
    %c0_27 = arith.constant 0 : index
    %c0_28 = arith.constant 0 : index
    %51 = vector.load %arg6[%c0_27, %c0_28] : memref<1x256xf32, #tpu.memory_space<vmem>>, vector<1x256xf32>
    tpu.vector_store %arg6[%c0_27, %c0_28], %50 {strides = array<i32>} : memref<1x256xf32, #tpu.memory_space<vmem>>, vector<1x256xf32>,
    return
  }
}

</mosaic_0001>

<bundles_post_ra>
// kernel: tpu_custom_call.1
= control target key start
LH: loop header
LB: loop body
LE: loop exit
PB: predicated region body
PF: predicated region fallthrough
CT: control target
= control target key end

     0   :  { %11 = vsyncpa [#allocation3], 0  ;;  %s390_s0 = inlined_call_operand.vmem [shape: f32[1,8,256], index: 0, kind: input, shape index: {}]   ;;  %s391_s1 = inlined_call_operand.vmem [shape: f32[8,1], index: 1, kind: input, shape index: {}]   ;;  %s392_s2 = inlined_call_operand.vmem [shape: f32[8,1], index: 2, kind: input, shape index: {}]   ;;  %s393_s3 = inlined_call_operand.hbm [shape: f32[8,8], index: 3, kind: input, shape index: {}]   ;;  %s394_s4 = inlined_call_operand.hbm [shape: f32[8,256], index: 4, kind: input, shape index: {}]   ;;  %s395_s5 = inlined_call_operand.vmem [shape: f32[1,256], index: 5, kind: input, shape index: {}]   ;;  %s396_s6 = inlined_call_operand.hbm [shape: f32[1,256], index: 6, kind: output, shape index: {}]  }
   0x1   :  { %12 = vsyncpa [#allocation6], 0 }
   0x2   :  { %13 = vsyncpa [#allocation4], 0  ;;  %s25_s23 = sshll.u32 %s393_s3, 4  ;;  %s323_s24 = smov [#allocation2]   ;;  %s26_s23 = int_to_ptr.hbm [resolvable:$true] %s25_s23 }
   0x3   :  { %s27_s25 = sshll.u32 %s323_s24, 4  ;;  %s36_s28 = sshll.u32 %s394_s4, 4  ;;  %s28_s25 = int_to_ptr.vmem [resolvable:$true] %s27_s25  ;;  %s37_s28 = int_to_ptr.hbm [resolvable:$true] %s36_s28 }
   0x4   :  { %30 = dma.hbm_to_vmem [thread:$0]  %s26_s23, 128, %s28_s25, [#allocation3]  }
   0x5   :  { %s324_s29 = smov [#allocation5]  }
   0x6   :  { %s38_s30 = sshll.u32 %s324_s29, 4  ;;  %s39_s30 = int_to_ptr.vmem [resolvable:$true] %s38_s30 }
   0x7   :  { %41 = dma.hbm_to_vmem [thread:$0]  %s37_s28, 256, %s39_s30, [#allocation6]  }
   0x8   :  { %317 = dma.done.wait [#allocation3], 128  }
   0x9   :  { %318 = vsyncadd [#allocation3], 4294967168 }
   0xa   :  { %319 = dma.done.wait [#allocation6], 256  }
   0xb   :  { %320 = vsyncadd [#allocation6], 4294967040  ;;  %v52_v0 = vld [vmem:[%s390_s0] sm:$0xff]  ;;  %v53_v1 = vld [vmem:[%s390_s0 + $0x8] sm:$0xff]  ;;  %vm61_vm0 = vcmask 64512   ;;  %v325_v9 = vmov 0   ;;  %v154_v41 = vlaneseq }
   0xc   :  { %v55_v2 = vadd.f32 %v53_v1, %v52_v0  ;;  %v60_v3 = vld [vmem:[#allocation2] sm:$0xff]  ;;  %v54_v4 = vmul.f32 %v52_v0, %v52_v0  ;;  %v56_v5 = vmul.f32 %v53_v1, %v53_v1  ;;  %241 = vset.pattern.permute.xlu1 %v325_v9  ;;  %242 = vset.pattern.permute.xlu0 %v325_v9  ;;  %v150_v39 = vld [vmem:[#allocation5] sm:$0xff]  ;;  %v151_v40 = vld [vmem:[#allocation5 + $0x8] sm:$0xff]  ;;  %s326_s12 = smov [#allocation7]   ;;  %s222_s16 = sshll.u32 %s396_s6, 4  ;;  %vm207_vm4 = vcmask 1040384   ;;  %s223_s16 = int_to_ptr.hbm [resolvable:$true] %s222_s16 }
   0xd   :  { %v125_v24 = vld [vmem:[%s391_s1] sm:$0xff]  ;;  %179 = vmatpush.msra.mxu2 %v150_v39  ;;  %199 = vmatpush.msra.mxu3 %v151_v40  ;;  %v155_v42 = vand.u32 127, %v154_v41  ;;  %s220_s13 = sshll.u32 %s326_s12, 4  ;;  %vm212_vm5 = vcmp.lt.s32.totalorder %v154_v41, 256  ;;  %s221_s13 = int_to_ptr.vmem [resolvable:$true] %s220_s13 }
   0xe   :  { %80 = vmatpush.msra.mxu0 %v55_v2  ;;  %v57_v6 = vadd.f32 %v56_v5, %v54_v4  ;;  %v127_v28 = vld [vmem:[%s392_s2] sm:$0xff] }
   0xf   :  { %233 = vmatmul.msk.f32.vlgmr.msra.gmra.mxu0 %vm61_vm0, %v60_v3  ;;  %v152_v46 = vld [vmem:[%s395_s5] sm:$0x3] }
  0x10   :  { %102 = vmatpush.msra.mxu1 %v57_v6  ;;  %v159_v47 = vperm.slane %v152_v46, 1  ;;  %v158_v48 = vperm.slane %v152_v46, 0 }
  0x11   :  { %234 = vmatmul.msk.f32.vlgmr.msra.gmra.mxu1 %vm61_vm0, %v60_v3 }
  0x8c   :  { %v82_v7 = vpop.f32.mrf.mxu0 }
  0x8d   :  { %85 = vadd.xlane.f32.xlu0 %v82_v7 }
  0x8e   :  { %v104_v8 = vpop.f32.mrf.mxu1 }
  0x95   :  { %107 = vadd.xlane.f32.xlu0 %v104_v8 }
 0x100   :  { %v86_v10 = vpop.xlane.xlu0 %85 }
 0x101   :  { %v109_v11 = vmul.f32 0.001953125, %v86_v10 }
 0x103   :  { %v111_v13 = vmul.f32 %v109_v11, %v109_v11 }
 0x108   :  { %v108_v12 = vpop.xlane.xlu0 %107 }
 0x109   :  { %v110_v14 = vmul.f32 0.001953125, %v108_v12 }
 0x10b   :  { %v112_v15 = vsub.f32 %v110_v14, %v111_v13 }
 0x10d   :  { %v113_v16 = vmax.f32 %v112_v15, 0.0 }
 0x10f   :  { %v114_v17 = vadd.f32 1e-05, %v113_v16 }
 0x111   :  { %243 = vrsqrt.f32 %v114_v17  ;;  %vm121_vm2 = vweird.f32 %v114_v17 }
 0x117   :  { %v244_v18 = vpop.eup %243 }
 0x118   :  { %v116_v19 = vmul.f32 %v244_v18, %v114_v17  ;;  %vm122_vm1 = vweird.f32 %v244_v18 }
 0x119   :  { %vm123_vm3 = vmor %vm121_vm2, %vm122_vm1 }
 0x11a   :  { %v117_v20 = vmul.f32 %v244_v18, %v116_v19 }
 0x11c   :  { %v118_v21 = vmul.f32 0.5, %v117_v20 }
 0x11e   :  { %v119_v22 = vsub.f32 1.5, %v118_v21 }
 0x120   :  { %v120_v23 = vmul.f32 %v244_v18, %v119_v22 }
 0x122   :  { %v124_v25 = vsel %vm123_vm3, %v244_v18, %v120_v23 }
 0x123   :  { %v126_v26 = vmul.f32 %v125_v24, %v124_v25 }
 0x125   :  { %132 = vperm.xlu1 %241, %v126_v26   ;;  %v128_v27 = vmul.f32 %v126_v26, %v109_v11 }
 0x127   :  { %v129_v29 = vsub.f32 %v127_v28, %v128_v27 }
 0x12d   :  { %139 = vperm.xlu1 %241, %v129_v29  }
 0x197   :  { %v133_v30 = vpop.permute.xlu1 %132 }
 0x198   :  { %v135_v31 = vmul.f32 %v133_v30, %v52_v0  ;;  %v136_v32 = vmul.f32 %v133_v30, %v53_v1 }
 0x19f   :  { %v140_v33 = vpop.permute.xlu1 %139 }
 0x1a0   :  { %v142_v34 = vadd.f32 %v140_v33, %v135_v31  ;;  %v143_v35 = vadd.f32 %v140_v33, %v136_v32 }
 0x1a2   :  { %v144_v36 = vmax.f32 %v142_v34, 0.0  ;;  %v145_v37 = vmax.f32 %v143_v35, 0.0 }
 0x1a4   :  { %v146_v38 = vadd.f32 %v145_v37, %v144_v36 }
 0x1a6   :  { %147 = vadd.xlane.f32.xlu2 %v146_v38 }
 0x219   :  { %v148_v43 = vpop.xlane.xlu2 %147 }
 0x21a   :  { %v149_v44 = vmul.f32 0.00390625, %v148_v43 }
 0x21c   :  { %v156_v45 = vperm.slane %v149_v44, %v155_v42 }
 0x21e   :  { %235 = vmatmul.msk.f32.vlgmr.msra.gmra.mxu2 %vm61_vm0, %v156_v45  ;;  %236 = vmatmul.msk.f32.vlgmr.msra.gmra.mxu3 %vm61_vm0, %v156_v45 }
 0x2a1   :  { %v181_v49 = vpop.f32.mrf.mxu2  ;;  %v201_v50 = vpop.f32.mrf.mxu3 }
 0x2a2   :  { %v202_v51 = vadd.f32 %v201_v50, %v159_v47  ;;  %v182_v52 = vadd.f32 %v181_v49, %v158_v48 }
 0x2a4   :  { %v206_v53 = vrot.slane %v202_v51, 7 }
 0x2a6   :  { %v208_v54 = vsel %vm207_vm4, %v182_v52, %v206_v53 }
 0x2a7   :  { %214 = vst.msk [vmem:[#allocation7] sm:$0x3] %vm212_vm5, %v208_v54 }
 0x2a8   :  { %225 = dma.vmem_to_hbm [thread:$0]  %s221_s13, 32, %s223_s16, [#allocation4]  }
 0x2a9   :  { %321 = dma.done.wait [#allocation4], 32  }
 0x2aa   :  { %322 = vsyncadd [#allocation4], 4294967264 }
 0x2ab   :  { %230 = vsyncpa [#allocation3], 1 }
 0x2ac   :  { %231 = vsyncpa [#allocation6], 1 }
 0x2ad   :  { %232 = vsyncpa [#allocation4], 1 }

</bundles_post_ra>
